<compile_context>
chip_gen: v7x
topology: tpu7x:2x2x1
jax: 0.10.0
libtpu: 0.0.40
codegen_flags: <defaults>
</compile_context>

<pallas_src>
import functools

import jax
import jax.numpy as jnp
from jax import lax
from jax.experimental import pallas as pl
from jax.experimental.pallas import tpu as pltpu

_LANES = 128      # TPU vreg lane width
_SUBLANES = 8     # TPU vreg sublane count


def _pick_tile_rows(rows, tile_rows, min_blocks=2):
    """Choose a row tile: big blocks for HBM BW, but >= min_blocks grid steps so
    the 'parallel' axis shards across both v7x TensorCores. The second-minor
    block dim stays a multiple of 8 (or equals the full array dim)."""
    if rows < min_blocks * _SUBLANES:
        return rows                                   # single full block (always legal)
    t = min(tile_rows, rows, pl.cdiv(rows, min_blocks))
    return max(_SUBLANES, (t // _SUBLANES) * _SUBLANES)


# ---------------------------------------------------------------------------
# Kernels
# ---------------------------------------------------------------------------
def _diag_scale_kernel(x_ref, b_ref, o_ref, *, scale):
    """y = x * (1/T) + b.  Pure VPU; scale is a trace-time constant."""
    o_ref[...] = (x_ref[...] * scale + b_ref[...]).astype(o_ref.dtype)


def _matmul_bias_kernel(x_ref, w_ref, b_ref, o_ref):
    """y = x @ W_eff + b, where W_eff is already oriented for right-multiply."""
    acc = jnp.dot(x_ref[...], w_ref[...], preferred_element_type=jnp.float32)
    o_ref[...] = (acc + b_ref[...]).astype(o_ref.dtype)


def _matmul_wt_bias_kernel(x_ref, w_ref, b_ref, o_ref):
    """y = x @ W.T + b (contract last dims; no wrapper-side transpose)."""
    acc = lax.dot_general(
        x_ref[...], w_ref[...],
        dimension_numbers=(((1,), (1,)), ((), ())),
        preferred_element_type=jnp.float32)
    o_ref[...] = (acc + b_ref[...]).astype(o_ref.dtype)


# ---------------------------------------------------------------------------
# Wrappers
# ---------------------------------------------------------------------------
def dirichlet_forward_diag(x, inv_temperature, bias, *, tile_rows=2048,
                           min_bytes_for_pallas=1 << 18):
    """Fast path, valid only while weight == diag(1/T) (i.e. the module at init).
    Once the calibration matrix is trained, call dirichlet_forward_dense."""
    B, C = x.shape
    dtype = x.dtype
    scale = float(inv_temperature)
    nbytes = x.size * x.dtype.itemsize

    # Size gate: tiny problems are cheaper as a fused XLA op than a kernel launch.
    if nbytes < min_bytes_for_pallas:
        return (x * jnp.asarray(scale, dtype) + bias.astype(dtype)).astype(dtype)

    kern = functools.partial(_diag_scale_kernel, scale=scale)

    if C % _LANES != 0 and (B * C) % _LANES == 0 and _LANES % C == 0:
        # Lane-dense view: [B, C] -> [rows, 128]; each 128-lane row holds 128/C
        # whole class vectors, so stores are full-width vst (not vst.msk).
        rows = (B * C) // _LANES
        x2 = x.reshape(rows, _LANES)
        b2 = jnp.tile(bias, _LANES // C).reshape(1, _LANES).astype(dtype)
        trows = _pick_tile_rows(rows, tile_rows)
        cost = pl.CostEstimate(
            flops=2 * rows * _LANES, transcendentals=0,
            bytes_accessed=(2 * rows * _LANES + _LANES) * x.dtype.itemsize)
        y2 = pl.pallas_call(
            kern,
            out_shape=jax.ShapeDtypeStruct((rows, _LANES), dtype),
            grid=(pl.cdiv(rows, trows),),
            in_specs=[
                pl.BlockSpec((trows, _LANES), lambda i: (i, 0)),   # x rows
                pl.BlockSpec((1, _LANES), lambda i: (0, 0)),       # bias (resident)
            ],
            out_specs=pl.BlockSpec((trows, _LANES), lambda i: (i, 0)),
            compiler_params=pltpu.CompilerParams(
                dimension_semantics=("parallel",)),
            cost_estimate=cost,
        )(x2, b2)
        return y2.reshape(B, C)

    # Fallback: [trows, C] blocks (last dim equals full array dim -> legal).
    trows = _pick_tile_rows(B, tile_rows)
    b2 = bias.reshape(1, C).astype(dtype)
    cost = pl.CostEstimate(
        flops=2 * B * C, transcendentals=0,
        bytes_accessed=(2 * B * C + C) * x.dtype.itemsize)
    return pl.pallas_call(
        kern,
        out_shape=jax.ShapeDtypeStruct((B, C), dtype),
        grid=(pl.cdiv(B, trows),),
        in_specs=[
            pl.BlockSpec((trows, C), lambda i: (i, 0)),
            pl.BlockSpec((1, C), lambda i: (0, 0)),
        ],
        out_specs=pl.BlockSpec((trows, C), lambda i: (i, 0)),
        compiler_params=pltpu.CompilerParams(dimension_semantics=("parallel",)),
        cost_estimate=cost,
    )(x, b2)


def dirichlet_forward_dense(x, weight, bias, *, tile_rows=2048,
                            min_bytes_for_pallas=1 << 18):
    """General path: y = x @ W.T + b for an arbitrary (trained) calibration matrix."""
    B, C = x.shape
    dtype = x.dtype
    nbytes = x.size * x.dtype.itemsize

    if nbytes < min_bytes_for_pallas:
        return (x @ weight.T + bias).astype(dtype)

    if C < _LANES and (B * C) % _LANES == 0 and _LANES % C == 0:
        # Lane-dense: view x as [rows, 128] and right-multiply by a 128x128
        # block-diagonal weight (128/C copies of W.T built once here). Removes
        # the 4x lane waste of (.., 32)-wide loads/stores; extra MXU flops are
        # free since the kernel is HBM-bound.
        reps = _LANES // C
        rows = (B * C) // _LANES
        x2 = x.reshape(rows, _LANES)
        w_bd = jnp.kron(jnp.eye(reps, dtype=weight.dtype), weight.T).astype(dtype)
        b2 = jnp.tile(bias, reps).reshape(1, _LANES).astype(dtype)
        trows = _pick_tile_rows(rows, tile_rows)
        cost = pl.CostEstimate(
            flops=2 * rows * _LANES * _LANES + rows * _LANES, transcendentals=0,
            bytes_accessed=(2 * rows * _LANES + _LANES * _LANES + _LANES)
            * x.dtype.itemsize)
        y2 = pl.pallas_call(
            _matmul_bias_kernel,
            out_shape=jax.ShapeDtypeStruct((rows, _LANES), dtype),
            grid=(pl.cdiv(rows, trows),),
            in_specs=[
                pl.BlockSpec((trows, _LANES), lambda i: (i, 0)),    # x rows
                pl.BlockSpec((_LANES, _LANES), lambda i: (0, 0)),   # block-diag W (resident)
                pl.BlockSpec((1, _LANES), lambda i: (0, 0)),        # bias (resident)
            ],
            out_specs=pl.BlockSpec((trows, _LANES), lambda i: (i, 0)),
            compiler_params=pltpu.CompilerParams(
                dimension_semantics=("parallel",)),
            cost_estimate=cost,
        )(x2, w_bd, b2)
        return y2.reshape(B, C)

    # General fallback: (trows, C) x blocks, W and bias resident, contract last dims.
    trows = _pick_tile_rows(B, tile_rows)
    b2 = bias.reshape(1, C).astype(dtype)
    cost = pl.CostEstimate(
        flops=2 * B * C * C + B * C, transcendentals=0,
        bytes_accessed=(2 * B * C + C * C + C) * x.dtype.itemsize)
    return pl.pallas_call(
        _matmul_wt_bias_kernel,
        out_shape=jax.ShapeDtypeStruct((B, C), dtype),
        grid=(pl.cdiv(B, trows),),
        in_specs=[
            pl.BlockSpec((trows, C), lambda i: (i, 0)),  # x rows
            pl.BlockSpec((C, C), lambda i: (0, 0)),      # W (resident)
            pl.BlockSpec((1, C), lambda i: (0, 0)),      # bias (resident)
        ],
        out_specs=pl.BlockSpec((trows, C), lambda i: (i, 0)),
        compiler_params=pltpu.CompilerParams(dimension_semantics=("parallel",)),
        cost_estimate=cost,
    )(x, weight, b2)


def make_dirichlet_params(num_classes, temperature_ref, dtype=jnp.float32):
    """Deterministic init exactly as in the PyTorch module's __init__."""
    weight = jnp.eye(num_classes, dtype=dtype) / jnp.asarray(
        temperature_ref, dtype=dtype)
    bias = jnp.zeros((num_classes,), dtype=dtype)
    return weight, bias


if __name__ == "__main__":
    num_classes = 32
    batch = 8
    temperature_ref = 1.5

    weight, bias = make_dirichlet_params(num_classes, temperature_ref)

    key = jax.random.PRNGKey(0)
    x = jax.random.normal(key, (batch, num_classes), dtype=jnp.float32)

    # Accurate reference: y = x @ W.T + b
    y_ref = jnp.dot(x, weight.T, precision=lax.Precision.HIGHEST) + bias

    # Force the Pallas kernels at this tiny demo size (the default size gate
    # would route such small problems to fused XLA).
    y_diag = jax.block_until_ready(
        dirichlet_forward_diag(x, 1.0 / temperature_ref, bias,
                               min_bytes_for_pallas=0))
    y_dense = jax.block_until_ready(
        dirichlet_forward_dense(x, weight, bias, min_bytes_for_pallas=0))
    # Gated path (plain fused jnp for tiny inputs) — must match too.
    y_gated = jax.block_until_ready(
        dirichlet_forward_diag(x, 1.0 / temperature_ref, bias))

    assert y_diag.shape == (batch, num_classes)
    assert y_dense.shape == (batch, num_classes)
    assert jnp.allclose(y_diag, y_ref, atol=1e-5, rtol=1e-5)
    assert jnp.allclose(y_gated, y_ref, atol=1e-5, rtol=1e-5)
    assert jnp.allclose(y_dense, y_ref, atol=2e-3, rtol=2e-3)

    # Slightly larger check: exercises the multi-block (>=2 grid steps) path and
    # a non-diagonal "trained" weight through the lane-dense dense kernel.
    xb = jax.random.normal(jax.random.PRNGKey(1), (512, num_classes),
                           dtype=jnp.float32)
    w_trained = weight + 0.01 * jax.random.normal(
        jax.random.PRNGKey(2), (num_classes, num_classes), dtype=jnp.float32)
    yb_diag_ref = xb * (1.0 / temperature_ref) + bias
    yb_dense_ref = jnp.dot(xb, w_trained.T, precision=lax.Precision.HIGHEST) + bias

    yb_diag = jax.block_until_ready(
        dirichlet_forward_diag(xb, 1.0 / temperature_ref, bias,
                               min_bytes_for_pallas=0))
    yb_dense = jax.block_until_ready(
        dirichlet_forward_dense(xb, w_trained, bias, min_bytes_for_pallas=0))

    assert jnp.allclose(yb_diag, yb_diag_ref, atol=1e-5, rtol=1e-5)
    assert jnp.allclose(yb_dense, yb_dense_ref, atol=2e-3, rtol=2e-3)

    print("KERNEL_OK")
</pallas_src>

<mosaic_0001>
module attributes {stable_mosaic.version = 11 : i64} {
  func.func @_diag_scale_kernel(%arg0: i32, %arg1: memref<2x128xf32, #tpu.memory_space<vmem>>, %arg2: memref<1x128xf32, #tpu.memory_space<vmem>>, %arg3: memref<2x128xf32, #tpu.memory_space<vmem>>) attributes {dimension_semantics = [#tpu.dimension_semantics<parallel>], iteration_bounds = array<i64: 1>, scalar_prefetch = 0 : i64, scratch_operands = 0 : i64, tpu.core_type = #tpu.core_type<tc>, window_params = [{transform_indices = @transform_0, window_bounds = array<i64: 2, 128>}, {pipeline_mode = #tpu.pipeline_mode<synchronous>, transform_indices = @transform_1, window_bounds = array<i64: 1, 128>}, {transform_indices = @transform_2, window_bounds = array<i64: 2, 128>}]} {
    %c0 = arith.constant 0 : index
    %c0_0 = arith.constant 0 : index
    %0 = vector.load %arg1[%c0, %c0_0] : memref<2x128xf32, #tpu.memory_space<vmem>>, vector<2x128xf32>
    %cst = arith.constant 0.666666686 : f32
    %1 = vector.broadcast %cst : f32 to vector<2x128xf32>
    %2 = arith.mulf %0, %1 : vector<2x128xf32>
    %c0_1 = arith.constant 0 : index
    %c0_2 = arith.constant 0 : index
    %3 = vector.load %arg2[%c0_1, %c0_2] : memref<1x128xf32, #tpu.memory_space<vmem>>, vector<1x128xf32>
    %4 = vector.broadcast %3 : vector<1x128xf32> to vector<2x128xf32>
    %5 = arith.addf %2, %4 : vector<2x128xf32>
    %c0_3 = arith.constant 0 : index
    %c0_4 = arith.constant 0 : index
    %6 = vector.load %arg3[%c0_3, %c0_4] : memref<2x128xf32, #tpu.memory_space<vmem>>, vector<2x128xf32>
    tpu.vector_store %arg3[%c0_3, %c0_4], %5 {strides = array<i32>} : memref<2x128xf32, #tpu.memory_space<vmem>>, vector<2x128xf32>,
    return
  }
  func.func @transform_0(%arg0: i32) -> (i32, i32) {
    %c0_i32 = arith.constant 0 : i32
    %c0_i32_0 = arith.constant 0 : i32
    return %arg0, %c0_i32 : i32, i32
  }
  func.func @transform_1(%arg0: i32) -> (i32, i32) {
    %c0_i32 = arith.constant 0 : i32
    %c0_i32_0 = arith.constant 0 : i32
    %c0_i32_1 = arith.constant 0 : i32
    return %c0_i32, %c0_i32_0 : i32, i32
  }
  func.func @transform_2(%arg0: i32) -> (i32, i32) {
    %c0_i32 = arith.constant 0 : i32
    %c0_i32_0 = arith.constant 0 : i32
    return %arg0, %c0_i32 : i32, i32
  }
}

</mosaic_0001>

<bundles_post_ra>
// kernel: tpu_custom_call.1
= control target key start
LH: loop header
LB: loop body
LE: loop exit
PB: predicated region body
PF: predicated region fallthrough
CT: control target
= control target key end

     0   :  { %7 = vsyncpa [#allocation3], 0  ;;  %s145_s0 = inlined_call_operand.hbm [shape: f32[2,128], index: 0, kind: input, shape index: {}]   ;;  %s146_s1 = inlined_call_operand.vmem [shape: f32[1,128], index: 1, kind: input, shape index: {}]   ;;  %s147_s2 = inlined_call_operand.hbm [shape: f32[2,128], index: 2, kind: output, shape index: {}]  }
   0x1   :  { %8 = vsyncpa [#allocation4], 0  ;;  %s101_s9 = smov [#allocation2]   ;;  %s53_s13 = scalar_lea.hbm %s145_s0, 32 }
   0x2   :  { %s15_s10 = sshll.u32 %s101_s9, 4  ;;  %p54_p0 = scmp.ne.s32.totalorder %s145_s0, %s53_s13  ;;  %s16_s10 = int_to_ptr.vmem [resolvable:$true] %s15_s10 }
   0x3   :  { %p57_p1 = scmp.lt.u32.totalorder %s53_s13, %s145_s0 }
   0x5   :  { %p59_p2 = pnand %p57_p1, %p54_p0 }
   0x7   :  { %62 = shalt.err (!%p59_p2)
}
   0x8   :  { %s63_s18 = scalar_lea.vmem %s16_s10, 32  ;;  %p68_p4 = scmp.lt.s32.totalorder %s16_s10, %s16_s10 }
   0x9   :  { %p64_p3 = scmp.ne.s32.totalorder %s16_s10, %s63_s18  ;;  %p69_p5 = scmp.lt.s32.totalorder %s63_s18, %s63_s18 }
   0xb   :  { %p70_p6 = por %p69_p5, %p68_p4 }
   0xd   :  { %p71_p7 = pnand %p70_p6, %p64_p3 }
   0xf   :  { %74 = shalt.err (!%p71_p7)
}
  0x10   :  { %18 = dma.hbm_to_vmem [thread:$0]  %s145_s0, 32, %s16_s10, [#allocation3]  }
  0x11   :  { %97 = dma.done.wait [#allocation3], 32  }
  0x12   :  { %98 = vsyncadd [#allocation3], 4294967264  ;;  %v24_v0 = vld [vmem:[#allocation2] sm:$0x3]  ;;  %s102_s23 = smov [#allocation5]  }
  0x13   :  { %v50_v1 = vld [vmem:[%s146_s1] ss:$0 sm:$0xff]  ;;  %s41_s24 = sshll.u32 %s102_s23, 4  ;;  %v25_v2 = vmul.f32 0.6666667, %v24_v0  ;;  %s42_s24 = int_to_ptr.vmem [resolvable:$true] %s41_s24 }
  0x14   :  { %s75_s25 = scalar_lea.vmem %s42_s24, 32  ;;  %p80_p9 = scmp.lt.s32.totalorder %s42_s24, %s42_s24 }
  0x15   :  { %v33_v3 = vadd.f32 %v50_v1, %v25_v2  ;;  %p76_p8 = scmp.ne.s32.totalorder %s42_s24, %s75_s25  ;;  %p81_p10 = scmp.lt.s32.totalorder %s75_s25, %s75_s25 }
  0x17   :  { %34 = vst [vmem:[#allocation5] sm:$0x3] %v33_v3  ;;  %p82_p11 = por %p81_p10, %p80_p9 }
  0x19   :  { %p83_p12 = pnand %p82_p11, %p76_p8 }
  0x1b   :  { %86 = shalt.err (!%p83_p12)
}
  0x1c   :  { %s87_s27 = scalar_lea.hbm %s147_s2, 32 }
  0x1d   :  { %p88_p13 = scmp.ne.s32.totalorder %s147_s2, %s87_s27  ;;  %p91_p0 = scmp.lt.u32.totalorder %s87_s27, %s147_s2 }
  0x1f   :  { %p93_p1 = pnand %p91_p0, %p88_p13 }
  0x21   :  { %96 = shalt.err (!%p93_p1)
}
  0x22   :  { %44 = dma.vmem_to_hbm [thread:$0]  %s42_s24, 32, %s147_s2, [#allocation4]  }
  0x23   :  { %99 = dma.done.wait [#allocation4], 32  }
  0x24   :  { %100 = vsyncadd [#allocation4], 4294967264 }
  0x25   :  { %48 = vsyncpa [#allocation3], 1 }
  0x26   :  { %49 = vsyncpa [#allocation4], 1 }

</bundles_post_ra>
